<compile_context>
chip_gen: v7x
topology: tpu7x:2x2x1
jax: 0.10.0
libtpu: 0.0.40
codegen_flags: <defaults>
</compile_context>

<pallas_src>
import functools
import math

import jax
import jax.numpy as jnp
from jax.experimental import pallas as pl
from jax.experimental.pallas import tpu as pltpu


def _round_up(n: int, m: int) -> int:
    return ((n + m - 1) // m) * m


def _pad2(a, rows: int, cols: int):
    r, c = a.shape
    return jnp.pad(a, ((0, rows - r), (0, cols - c)))


def _choose_batch_tile(batch: int, max_tile: int = 512) -> int:
    """Batch tile: <= max_tile rows, sublane aligned; for large batches use an
    even number of tiles so the 'parallel' grid axis splits across v7x's 2 TCs."""
    if batch <= 8:
        return 8
    n_tiles = -(-batch // max_tile)                 # ceil
    if n_tiles > 1 and n_tiles % 2 == 1:
        n_tiles += 1                                # even tile count -> 2-TC balance
    return _round_up(-(-batch // n_tiles), 8)


def _mlp_kernel(s_ref, p_ref, w1s_ref, w1p_ref, b1_ref,
                w2_ref, b2_ref, w3_ref, b3_ref, o_ref):
    mxu_dt = w2_ref.dtype  # f32 by default; bf16 if prepare_params requested it
    # Layer 1: fused concat via two dots on the pre-split W1 (native K widths).
    h1 = (jnp.dot(s_ref[...].astype(mxu_dt), w1s_ref[...],
                  preferred_element_type=jnp.float32)
          + jnp.dot(p_ref[...].astype(mxu_dt), w1p_ref[...],
                    preferred_element_type=jnp.float32)
          + b1_ref[...])
    h1 = jnp.maximum(h1, 0.0)                       # bias add / ReLU stay f32 (VPU)

    h2 = jnp.dot(h1.astype(mxu_dt), w2_ref[...],
                 preferred_element_type=jnp.float32) + b2_ref[...]
    h2 = jnp.maximum(h2, 0.0)

    out = jnp.dot(h2.astype(mxu_dt), w3_ref[...],
                  preferred_element_type=jnp.float32) + b3_ref[...]
    o_ref[...] = out.astype(o_ref.dtype)            # lane-dense (tb, 128) store


def _resident_spec(shape, single_buffer: bool):
    """Weights/biases: constant index_map -> stay VMEM-resident across the batch
    grid. single_buffer=True additionally drops the (useless) double buffer."""
    if single_buffer:
        return pl.BlockSpec(shape, lambda i: (0, 0),
                            pipeline_mode=pl.Buffered(buffer_count=1))
    return pl.BlockSpec(shape, lambda i: (0, 0))


@functools.partial(jax.jit, static_argnames=("ac_dim", "single_buffer_weights"))
def _forward_impl(state, prompt, w1s, w1p, b1, w2, b2, w3, b3, *,
                  ac_dim: int, single_buffer_weights: bool):
    batch, sd = state.shape
    pd = prompt.shape[1]
    a_pad = w3.shape[1]

    tb = _choose_batch_tile(batch)
    b_pad = _round_up(batch, tb)
    grid = (b_pad // tb,)

    # Only the batch (sublane) axis needs padding; feature dims stay native.
    state_p = jnp.pad(state.astype(jnp.float32), ((0, b_pad - batch), (0, 0)))
    prompt_p = jnp.pad(prompt.astype(jnp.float32), ((0, b_pad - batch), (0, 0)))

    act = lambda cols: pl.BlockSpec((tb, cols), lambda i: (i, 0))
    res = lambda a: _resident_spec(a.shape, single_buffer_weights)

    out_padded = pl.pallas_call(
        _mlp_kernel,
        out_shape=jax.ShapeDtypeStruct((b_pad, a_pad), jnp.float32),
        grid=grid,
        in_specs=[
            act(sd),                       # state tile  (tb, state_dim)  native width
            act(pd),                       # prompt tile (tb, prompt_dim) native width
            res(w1s), res(w1p), res(b1),   # resident layer-1 weights/bias
            res(w2), res(b2),
            res(w3), res(b3),
        ],
        out_specs=pl.BlockSpec((tb, a_pad), lambda i: (i, 0)),
        compiler_params=pltpu.CompilerParams(
            # Independent batch tiles -> shard across v7x's 2 TCs (no-op v5e/v6e).
            dimension_semantics=("parallel",),
            # Resident weights + a few activation tiles are far below this; safe
            # on every generation (incl. v7x's 64 MiB physical VMEM).
            vmem_limit_bytes=32 * 1024 * 1024,
        ),
    )(state_p, prompt_p, w1s, w1p, b1, w2, b2, w3, b3)

    # Free layout plumbing: strip batch padding and output-lane padding outside.
    return out_padded[:batch, :ac_dim]


_SINGLE_BUFFER_OK = [True]  # flips to False if pipeline_mode is unsupported


def net_forward(state, prompt, prepped):
    """Forward pass matching PyTorch Net.forward; `prepped` from prepare_params."""
    if state.ndim == 1:
        state = state[None, :]
    if prompt.ndim == 1:
        prompt = prompt[None, :]
    arrays, ac_dim = prepped
    if _SINGLE_BUFFER_OK[0]:
        try:
            return _forward_impl(state, prompt, *arrays, ac_dim=ac_dim,
                                 single_buffer_weights=True)
        except Exception:
            # pl.Buffered(1) / pipeline_mode not supported by this JAX build ->
            # fall back to default double-buffered resident weights (still correct).
            _SINGLE_BUFFER_OK[0] = False
    return _forward_impl(state, prompt, *arrays, ac_dim=ac_dim,
                         single_buffer_weights=False)


def prepare_params(params, state_dim: int, *, matmul_dtype=jnp.float32):
    """One-time weight preparation (hoisted out of the per-call path):
      - split W1 into state / prompt halves (fused concat inside the kernel),
      - zero-pad hidden / action dims to 128 lanes,
      - cast matmul operands to matmul_dtype (use jnp.bfloat16 on v6e/v7x for
        ~2-3x MXU throughput; biases stay f32 so accumulate/ReLU are f32).
    Returns (arrays_tuple, ac_dim)."""
    w1, b1, w2, b2, w3, b3 = params
    in_dim, hid = w1.shape
    ac = w3.shape[1]
    h_pad = _round_up(hid, 128)
    a_pad = _round_up(ac, 128)
    f32 = jnp.float32
    arrays = (
        _pad2(w1[:state_dim], state_dim, h_pad).astype(matmul_dtype),           # W1_state
        _pad2(w1[state_dim:], in_dim - state_dim, h_pad).astype(matmul_dtype),  # W1_prompt
        _pad2(b1.astype(f32), 1, h_pad),
        _pad2(w2, h_pad, h_pad).astype(matmul_dtype),
        _pad2(b2.astype(f32), 1, h_pad),
        _pad2(w3, h_pad, a_pad).astype(matmul_dtype),
        _pad2(b3.astype(f32), 1, a_pad),
    )
    arrays = tuple(jax.device_put(a) for a in arrays)
    return arrays, ac


def init_params(key, state_dim, prompt_dim, ac_dim, hid_dim=128):
    """Deterministic init mimicking nn.Linear's U(-1/sqrt(fan_in), 1/sqrt(fan_in))."""
    in_dim = state_dim + prompt_dim
    dims = [(in_dim, hid_dim), (hid_dim, hid_dim), (hid_dim, ac_dim)]
    params = []
    for (fan_in, fan_out) in dims:
        key, kw, kb = jax.random.split(key, 3)
        bound = 1.0 / math.sqrt(fan_in)
        w = jax.random.uniform(kw, (fan_in, fan_out), jnp.float32, -bound, bound)
        b = jax.random.uniform(kb, (1, fan_out), jnp.float32, -bound, bound)
        params += [w, b]
    return tuple(params)


def net_reference(state, prompt, params):
    """Pure-JAX reference for correctness checking."""
    if state.ndim == 1:
        state = state[None, :]
    if prompt.ndim == 1:
        prompt = prompt[None, :]
    x = jnp.concatenate([state, prompt], axis=1)
    w1, b1, w2, b2, w3, b3 = params
    h1 = jnp.maximum(x @ w1 + b1, 0.0)
    h2 = jnp.maximum(h1 @ w2 + b2, 0.0)
    return h2 @ w3 + b3


if __name__ == "__main__":
    # Small shapes consistent with the module: batch=2, state_dim=8, prompt_dim=8,
    # ac_dim=4, hid_dim=32.
    state_dim, prompt_dim, ac_dim, hid_dim = 8, 8, 4, 32
    batch = 2

    key = jax.random.PRNGKey(0)
    kp, ks, kq = jax.random.split(key, 3)

    params = init_params(kp, state_dim, prompt_dim, ac_dim, hid_dim)
    # One-time weight prep (f32 matmuls here; pass matmul_dtype=jnp.bfloat16 on
    # v6e/v7x for the MXU-throughput lever once tolerance is validated).
    prepped = prepare_params(params, state_dim)

    state = jax.random.normal(ks, (batch, state_dim), jnp.float32)
    prompt = jax.random.normal(kq, (batch, prompt_dim), jnp.float32)

    out = jax.block_until_ready(net_forward(state, prompt, prepped))
    ref = net_reference(state, prompt, params)

    assert out.shape == (batch, ac_dim), out.shape
    assert jnp.allclose(out, ref, atol=1e-4, rtol=1e-4), "mismatch vs reference"

    print("KERNEL_OK")
</pallas_src>

<mosaic_0001>
module attributes {stable_mosaic.version = 11 : i64} {
  func.func @_mlp_kernel(%arg0: i32, %arg1: memref<8x8xf32, #tpu.memory_space<vmem>>, %arg2: memref<8x8xf32, #tpu.memory_space<vmem>>, %arg3: memref<8x128xf32, #tpu.memory_space<vmem>>, %arg4: memref<8x128xf32, #tpu.memory_space<vmem>>, %arg5: memref<1x128xf32, #tpu.memory_space<vmem>>, %arg6: memref<128x128xf32, #tpu.memory_space<vmem>>, %arg7: memref<1x128xf32, #tpu.memory_space<vmem>>, %arg8: memref<128x128xf32, #tpu.memory_space<vmem>>, %arg9: memref<1x128xf32, #tpu.memory_space<vmem>>, %arg10: memref<8x128xf32, #tpu.memory_space<vmem>>) attributes {dimension_semantics = [#tpu.dimension_semantics<parallel>], iteration_bounds = array<i64: 1>, scalar_prefetch = 0 : i64, scratch_operands = 0 : i64, tpu.core_type = #tpu.core_type<tc>, window_params = [{transform_indices = @transform_0, window_bounds = array<i64: 8, 8>}, {transform_indices = @transform_1, window_bounds = array<i64: 8, 8>}, {pipeline_mode = #tpu.pipeline_mode<synchronous>, transform_indices = @transform_2, window_bounds = array<i64: 8, 128>}, {pipeline_mode = #tpu.pipeline_mode<synchronous>, transform_indices = @transform_3, window_bounds = array<i64: 8, 128>}, {pipeline_mode = #tpu.pipeline_mode<synchronous>, transform_indices = @transform_4, window_bounds = array<i64: 1, 128>}, {pipeline_mode = #tpu.pipeline_mode<synchronous>, transform_indices = @transform_5, window_bounds = array<i64: 128, 128>}, {pipeline_mode = #tpu.pipeline_mode<synchronous>, transform_indices = @transform_6, window_bounds = array<i64: 1, 128>}, {pipeline_mode = #tpu.pipeline_mode<synchronous>, transform_indices = @transform_7, window_bounds = array<i64: 128, 128>}, {pipeline_mode = #tpu.pipeline_mode<synchronous>, transform_indices = @transform_8, window_bounds = array<i64: 1, 128>}, {transform_indices = @transform_9, window_bounds = array<i64: 8, 128>}]} {
    %c0 = arith.constant 0 : index
    %c0_0 = arith.constant 0 : index
    %0 = vector.load %arg1[%c0, %c0_0] : memref<8x8xf32, #tpu.memory_space<vmem>>, vector<8x8xf32>
    %c0_1 = arith.constant 0 : index
    %c0_2 = arith.constant 0 : index
    %1 = vector.load %arg3[%c0_1, %c0_2] : memref<8x128xf32, #tpu.memory_space<vmem>>, vector<8x128xf32>
    %cst = arith.constant dense<0.000000e+00> : vector<8x128xf32>
    %2 = tpu.matmul %0, %1, %cst {dimension_numbers = #tpu.dot_dimension_numbers<[1], [0], [0], [1], [0, 0, 1, 1], [], []>} : vector<8x8xf32>, vector<8x128xf32>, vector<8x128xf32> -> vector<8x128xf32>
    %c0_3 = arith.constant 0 : index
    %c0_4 = arith.constant 0 : index
    %3 = vector.load %arg2[%c0_3, %c0_4] : memref<8x8xf32, #tpu.memory_space<vmem>>, vector<8x8xf32>
    %c0_5 = arith.constant 0 : index
    %c0_6 = arith.constant 0 : index
    %4 = vector.load %arg4[%c0_5, %c0_6] : memref<8x128xf32, #tpu.memory_space<vmem>>, vector<8x128xf32>
    %cst_7 = arith.constant dense<0.000000e+00> : vector<8x128xf32>
    %5 = tpu.matmul %3, %4, %cst_7 {dimension_numbers = #tpu.dot_dimension_numbers<[1], [0], [0], [1], [0, 0, 1, 1], [], []>} : vector<8x8xf32>, vector<8x128xf32>, vector<8x128xf32> -> vector<8x128xf32>
    %6 = arith.addf %2, %5 : vector<8x128xf32>
    %c0_8 = arith.constant 0 : index
    %c0_9 = arith.constant 0 : index
    %7 = vector.load %arg5[%c0_8, %c0_9] : memref<1x128xf32, #tpu.memory_space<vmem>>, vector<1x128xf32>
    %8 = vector.broadcast %7 : vector<1x128xf32> to vector<8x128xf32>
    %9 = arith.addf %6, %8 : vector<8x128xf32>
    %cst_10 = arith.constant 0.000000e+00 : f32
    %10 = vector.broadcast %cst_10 : f32 to vector<8x128xf32>
    %11 = arith.maximumf %9, %10 : vector<8x128xf32>
    %c0_11 = arith.constant 0 : index
    %c0_12 = arith.constant 0 : index
    %12 = vector.load %arg6[%c0_11, %c0_12] : memref<128x128xf32, #tpu.memory_space<vmem>>, vector<128x128xf32>
    %cst_13 = arith.constant dense<0.000000e+00> : vector<8x128xf32>
    %13 = tpu.matmul %11, %12, %cst_13 {dimension_numbers = #tpu.dot_dimension_numbers<[1], [0], [0], [1], [0, 0, 1, 1], [], []>} : vector<8x128xf32>, vector<128x128xf32>, vector<8x128xf32> -> vector<8x128xf32>
    %c0_14 = arith.constant 0 : index
    %c0_15 = arith.constant 0 : index
    %14 = vector.load %arg7[%c0_14, %c0_15] : memref<1x128xf32, #tpu.memory_space<vmem>>, vector<1x128xf32>
    %15 = vector.broadcast %14 : vector<1x128xf32> to vector<8x128xf32>
    %16 = arith.addf %13, %15 : vector<8x128xf32>
    %cst_16 = arith.constant 0.000000e+00 : f32
    %17 = vector.broadcast %cst_16 : f32 to vector<8x128xf32>
    %18 = arith.maximumf %16, %17 : vector<8x128xf32>
    %c0_17 = arith.constant 0 : index
    %c0_18 = arith.constant 0 : index
    %19 = vector.load %arg8[%c0_17, %c0_18] : memref<128x128xf32, #tpu.memory_space<vmem>>, vector<128x128xf32>
    %cst_19 = arith.constant dense<0.000000e+00> : vector<8x128xf32>
    %20 = tpu.matmul %18, %19, %cst_19 {dimension_numbers = #tpu.dot_dimension_numbers<[1], [0], [0], [1], [0, 0, 1, 1], [], []>} : vector<8x128xf32>, vector<128x128xf32>, vector<8x128xf32> -> vector<8x128xf32>
    %c0_20 = arith.constant 0 : index
    %c0_21 = arith.constant 0 : index
    %21 = vector.load %arg9[%c0_20, %c0_21] : memref<1x128xf32, #tpu.memory_space<vmem>>, vector<1x128xf32>
    %22 = vector.broadcast %21 : vector<1x128xf32> to vector<8x128xf32>
    %23 = arith.addf %20, %22 : vector<8x128xf32>
    %c0_22 = arith.constant 0 : index
    %c0_23 = arith.constant 0 : index
    %24 = vector.load %arg10[%c0_22, %c0_23] : memref<8x128xf32, #tpu.memory_space<vmem>>, vector<8x128xf32>
    tpu.vector_store %arg10[%c0_22, %c0_23], %23 {strides = array<i32>} : memref<8x128xf32, #tpu.memory_space<vmem>>, vector<8x128xf32>,
    return
  }
  func.func @transform_0(%arg0: i32) -> (i32, i32) {
    %c0_i32 = arith.constant 0 : i32
    %c0_i32_0 = arith.constant 0 : i32
    return %arg0, %c0_i32 : i32, i32
  }
  func.func @transform_1(%arg0: i32) -> (i32, i32) {
    %c0_i32 = arith.constant 0 : i32
    %c0_i32_0 = arith.constant 0 : i32
    return %arg0, %c0_i32 : i32, i32
  }
  func.func @transform_2(%arg0: i32) -> (i32, i32) {
    %c0_i32 = arith.constant 0 : i32
    %c0_i32_0 = arith.constant 0 : i32
    %c0_i32_1 = arith.constant 0 : i32
    return %c0_i32, %c0_i32_0 : i32, i32
  }
  func.func @transform_3(%arg0: i32) -> (i32, i32) {
    %c0_i32 = arith.constant 0 : i32
    %c0_i32_0 = arith.constant 0 : i32
    %c0_i32_1 = arith.constant 0 : i32
    return %c0_i32, %c0_i32_0 : i32, i32
  }
  func.func @transform_4(%arg0: i32) -> (i32, i32) {
    %c0_i32 = arith.constant 0 : i32
    %c0_i32_0 = arith.constant 0 : i32
    %c0_i32_1 = arith.constant 0 : i32
    return %c0_i32, %c0_i32_0 : i32, i32
  }
  func.func @transform_5(%arg0: i32) -> (i32, i32) {
    %c0_i32 = arith.constant 0 : i32
    %c0_i32_0 = arith.constant 0 : i32
    %c0_i32_1 = arith.constant 0 : i32
    return %c0_i32, %c0_i32_0 : i32, i32
  }
  func.func @transform_6(%arg0: i32) -> (i32, i32) {
    %c0_i32 = arith.constant 0 : i32
    %c0_i32_0 = arith.constant 0 : i32
    %c0_i32_1 = arith.constant 0 : i32
    return %c0_i32, %c0_i32_0 : i32, i32
  }
  func.func @transform_7(%arg0: i32) -> (i32, i32) {
    %c0_i32 = arith.constant 0 : i32
    %c0_i32_0 = arith.constant 0 : i32
    %c0_i32_1 = arith.constant 0 : i32
    return %c0_i32, %c0_i32_0 : i32, i32
  }
  func.func @transform_8(%arg0: i32) -> (i32, i32) {
    %c0_i32 = arith.constant 0 : i32
    %c0_i32_0 = arith.constant 0 : i32
    %c0_i32_1 = arith.constant 0 : i32
    return %c0_i32, %c0_i32_0 : i32, i32
  }
  func.func @transform_9(%arg0: i32) -> (i32, i32) {
    %c0_i32 = arith.constant 0 : i32
    %c0_i32_0 = arith.constant 0 : i32
    return %arg0, %c0_i32 : i32, i32
  }
}

module attributes {stable_mosaic.version = 11 : i64} {
  func.func @_mlp_kernel(%arg0: i32, %arg1: memref<8x8xf32, #tpu.memory_space<vmem>>, %arg2: memref<8x8xf32, #tpu.memory_space<vmem>>, %arg3: memref<8x128xf32, #tpu.memory_space<vmem>>, %arg4: memref<8x128xf32, #tpu.memory_space<vmem>>, %arg5: memref<1x128xf32, #tpu.memory_space<vmem>>, %arg6: memref<128x128xf32, #tpu.memory_space<vmem>>, %arg7: memref<1x128xf32, #tpu.memory_space<vmem>>, %arg8: memref<128x128xf32, #tpu.memory_space<vmem>>, %arg9: memref<1x128xf32, #tpu.memory_space<vmem>>, %arg10: memref<8x128xf32, #tpu.memory_space<vmem>>) attributes {dimension_semantics = [#tpu.dimension_semantics<parallel>], iteration_bounds = array<i64: 1>, scalar_prefetch = 0 : i64, scratch_operands = 0 : i64, tpu.core_type = #tpu.core_type<tc>, window_params = [{transform_indices = @transform_0, window_bounds = array<i64: 8, 8>}, {transform_indices = @transform_1, window_bounds = array<i64: 8, 8>}, {pipeline_mode = #tpu.pipeline_mode<synchronous>, transform_indices = @transform_2, window_bounds = array<i64: 8, 128>}, {pipeline_mode = #tpu.pipeline_mode<synchronous>, transform_indices = @transform_3, window_bounds = array<i64: 8, 128>}, {pipeline_mode = #tpu.pipeline_mode<synchronous>, transform_indices = @transform_4, window_bounds = array<i64: 1, 128>}, {pipeline_mode = #tpu.pipeline_mode<synchronous>, transform_indices = @transform_5, window_bounds = array<i64: 128, 128>}, {pipeline_mode = #tpu.pipeline_mode<synchronous>, transform_indices = @transform_6, window_bounds = array<i64: 1, 128>}, {pipeline_mode = #tpu.pipeline_mode<synchronous>, transform_indices = @transform_7, window_bounds = array<i64: 128, 128>}, {pipeline_mode = #tpu.pipeline_mode<synchronous>, transform_indices = @transform_8, window_bounds = array<i64: 1, 128>}, {transform_indices = @transform_9, window_bounds = array<i64: 8, 128>}]} {
    %c0 = arith.constant 0 : index
    %c0_0 = arith.constant 0 : index
    %0 = vector.load %arg1[%c0, %c0_0] : memref<8x8xf32, #tpu.memory_space<vmem>>, vector<8x8xf32>
    %c0_1 = arith.constant 0 : index
    %c0_2 = arith.constant 0 : index
    %1 = vector.load %arg3[%c0_1, %c0_2] : memref<8x128xf32, #tpu.memory_space<vmem>>, vector<8x128xf32>
    %cst = arith.constant dense<0.000000e+00> : vector<8x128xf32>
    %2 = tpu.matmul %0, %1, %cst {dimension_numbers = #tpu.dot_dimension_numbers<[1], [0], [0], [1], [0, 0, 1, 1], [], []>} : vector<8x8xf32>, vector<8x128xf32>, vector<8x128xf32> -> vector<8x128xf32>
    %c0_3 = arith.constant 0 : index
    %c0_4 = arith.constant 0 : index
    %3 = vector.load %arg2[%c0_3, %c0_4] : memref<8x8xf32, #tpu.memory_space<vmem>>, vector<8x8xf32>
    %c0_5 = arith.constant 0 : index
    %c0_6 = arith.constant 0 : index
    %4 = vector.load %arg4[%c0_5, %c0_6] : memref<8x128xf32, #tpu.memory_space<vmem>>, vector<8x128xf32>
    %cst_7 = arith.constant dense<0.000000e+00> : vector<8x128xf32>
    %5 = tpu.matmul %3, %4, %cst_7 {dimension_numbers = #tpu.dot_dimension_numbers<[1], [0], [0], [1], [0, 0, 1, 1], [], []>} : vector<8x8xf32>, vector<8x128xf32>, vector<8x128xf32> -> vector<8x128xf32>
    %6 = arith.addf %2, %5 : vector<8x128xf32>
    %c0_8 = arith.constant 0 : index
    %c0_9 = arith.constant 0 : index
    %7 = vector.load %arg5[%c0_8, %c0_9] : memref<1x128xf32, #tpu.memory_space<vmem>>, vector<1x128xf32>
    %8 = vector.broadcast %7 : vector<1x128xf32> to vector<8x128xf32>
    %9 = arith.addf %6, %8 : vector<8x128xf32>
    %cst_10 = arith.constant 0.000000e+00 : f32
    %10 = vector.broadcast %cst_10 : f32 to vector<8x128xf32>
    %11 = arith.maximumf %9, %10 : vector<8x128xf32>
    %c0_11 = arith.constant 0 : index
    %c0_12 = arith.constant 0 : index
    %12 = vector.load %arg6[%c0_11, %c0_12] : memref<128x128xf32, #tpu.memory_space<vmem>>, vector<128x128xf32>
    %cst_13 = arith.constant dense<0.000000e+00> : vector<8x128xf32>
    %13 = tpu.matmul %11, %12, %cst_13 {dimension_numbers = #tpu.dot_dimension_numbers<[1], [0], [0], [1], [0, 0, 1, 1], [], []>} : vector<8x128xf32>, vector<128x128xf32>, vector<8x128xf32> -> vector<8x128xf32>
    %c0_14 = arith.constant 0 : index
    %c0_15 = arith.constant 0 : index
    %14 = vector.load %arg7[%c0_14, %c0_15] : memref<1x128xf32, #tpu.memory_space<vmem>>, vector<1x128xf32>
    %15 = vector.broadcast %14 : vector<1x128xf32> to vector<8x128xf32>
    %16 = arith.addf %13, %15 : vector<8x128xf32>
    %cst_16 = arith.constant 0.000000e+00 : f32
    %17 = vector.broadcast %cst_16 : f32 to vector<8x128xf32>
    %18 = arith.maximumf %16, %17 : vector<8x128xf32>
    %c0_17 = arith.constant 0 : index
    %c0_18 = arith.constant 0 : index
    %19 = vector.load %arg8[%c0_17, %c0_18] : memref<128x128xf32, #tpu.memory_space<vmem>>, vector<128x128xf32>
    %cst_19 = arith.constant dense<0.000000e+00> : vector<8x128xf32>
    %20 = tpu.matmul %18, %19, %cst_19 {dimension_numbers = #tpu.dot_dimension_numbers<[1], [0], [0], [1], [0, 0, 1, 1], [], []>} : vector<8x128xf32>, vector<128x128xf32>, vector<8x128xf32> -> vector<8x128xf32>
    %c0_20 = arith.constant 0 : index
    %c0_21 = arith.constant 0 : index
    %21 = vector.load %arg9[%c0_20, %c0_21] : memref<1x128xf32, #tpu.memory_space<vmem>>, vector<1x128xf32>
    %22 = vector.broadcast %21 : vector<1x128xf32> to vector<8x128xf32>
    %23 = arith.addf %20, %22 : vector<8x128xf32>
    %c0_22 = arith.constant 0 : index
    %c0_23 = arith.constant 0 : index
    %24 = vector.load %arg10[%c0_22, %c0_23] : memref<8x128xf32, #tpu.memory_space<vmem>>, vector<8x128xf32>
    tpu.vector_store %arg10[%c0_22, %c0_23], %23 {strides = array<i32>} : memref<8x128xf32, #tpu.memory_space<vmem>>, vector<8x128xf32>,
    return
  }
  func.func @transform_0(%arg0: i32) -> (i32, i32) {
    %c0_i32 = arith.constant 0 : i32
    %c0_i32_0 = arith.constant 0 : i32
    return %arg0, %c0_i32 : i32, i32
  }
  func.func @transform_1(%arg0: i32) -> (i32, i32) {
    %c0_i32 = arith.constant 0 : i32
    %c0_i32_0 = arith.constant 0 : i32
    return %arg0, %c0_i32 : i32, i32
  }
  func.func @transform_2(%arg0: i32) -> (i32, i32) {
    %c0_i32 = arith.constant 0 : i32
    %c0_i32_0 = arith.constant 0 : i32
    %c0_i32_1 = arith.constant 0 : i32
    return %c0_i32, %c0_i32_0 : i32, i32
  }
  func.func @transform_3(%arg0: i32) -> (i32, i32) {
    %c0_i32 = arith.constant 0 : i32
    %c0_i32_0 = arith.constant 0 : i32
    %c0_i32_1 = arith.constant 0 : i32
    return %c0_i32, %c0_i32_0 : i32, i32
  }
  func.func @transform_4(%arg0: i32) -> (i32, i32) {
    %c0_i32 = arith.constant 0 : i32
    %c0_i32_0 = arith.constant 0 : i32
    %c0_i32_1 = arith.constant 0 : i32
    return %c0_i32, %c0_i32_0 : i32, i32
  }
  func.func @transform_5(%arg0: i32) -> (i32, i32) {
    %c0_i32 = arith.constant 0 : i32
    %c0_i32_0 = arith.constant 0 : i32
    %c0_i32_1 = arith.constant 0 : i32
    return %c0_i32, %c0_i32_0 : i32, i32
  }
  func.func @transform_6(%arg0: i32) -> (i32, i32) {
    %c0_i32 = arith.constant 0 : i32
    %c0_i32_0 = arith.constant 0 : i32
    %c0_i32_1 = arith.constant 0 : i32
    return %c0_i32, %c0_i32_0 : i32, i32
  }
  func.func @transform_7(%arg0: i32) -> (i32, i32) {
    %c0_i32 = arith.constant 0 : i32
    %c0_i32_0 = arith.constant 0 : i32
    %c0_i32_1 = arith.constant 0 : i32
    return %c0_i32, %c0_i32_0 : i32, i32
  }
  func.func @transform_8(%arg0: i32) -> (i32, i32) {
    %c0_i32 = arith.constant 0 : i32
    %c0_i32_0 = arith.constant 0 : i32
    %c0_i32_1 = arith.constant 0 : i32
    return %c0_i32, %c0_i32_0 : i32, i32
  }
  func.func @transform_9(%arg0: i32) -> (i32, i32) {
    %c0_i32 = arith.constant 0 : i32
    %c0_i32_0 = arith.constant 0 : i32
    return %arg0, %c0_i32 : i32, i32
  }
}

</mosaic_0001>

<bundles_post_ra>
// kernel: _forward_impl.1
= control target key start
LH: loop header
LB: loop body
LE: loop exit
PB: predicated region body
PF: predicated region fallthrough
CT: control target
= control target key end

     0   :  { %14 = vsyncpa [#allocation3], 0  ;;  %s765_s0 = inlined_call_operand.vmem [shape: f32[8,8], index: 0, kind: input, shape index: {}]   ;;  %s766_s1 = inlined_call_operand.vmem [shape: f32[8,8], index: 1, kind: input, shape index: {}]   ;;  %s767_s2 = inlined_call_operand.vmem [shape: f32[8,128], index: 2, kind: input, shape index: {}]   ;;  %s768_s3 = inlined_call_operand.vmem [shape: f32[8,128], index: 3, kind: input, shape index: {}]   ;;  %s769_s4 = inlined_call_operand.vmem [shape: f32[1,128], index: 4, kind: input, shape index: {}]   ;;  %s770_s5 = inlined_call_operand.hbm [shape: f32[128,128], index: 5, kind: input, shape index: {}]   ;;  %s771_s6 = inlined_call_operand.vmem [shape: f32[1,128], index: 6, kind: input, shape index: {}]   ;;  %s772_s7 = inlined_call_operand.hbm [shape: f32[128,128], index: 7, kind: input, shape index: {}]   ;;  %s773_s8 = inlined_call_operand.vmem [shape: f32[1,128], index: 8, kind: input, shape index: {}]   ;;  %s774_s9 = inlined_call_operand.vmem [shape: f32[8,128], index: 9, kind: output, shape index: {}]  }
   0x1   :  { %15 = vsyncpa [#allocation5], 0  ;;  %s640_s30 = smov [#allocation2]   ;;  %s592_s13 = scalar_lea.hbm %s770_s5, 2048 }
   0x2   :  { %s31_s10 = sshll.u32 %s640_s30, 4  ;;  %p593_p0 = scmp.ne.s32.totalorder %s770_s5, %s592_s13  ;;  %s32_s10 = int_to_ptr.vmem [resolvable:$true] %s31_s10 }
   0x3   :  { %p596_p1 = scmp.lt.u32.totalorder %s592_s13, %s770_s5 }
   0x5   :  { %p598_p2 = pnand %p596_p1, %p593_p0 }
   0x7   :  { %601 = shalt.err (!%p598_p2)
}
   0x8   :  { %s602_s18 = scalar_lea.vmem %s32_s10, 2048  ;;  %p607_p4 = scmp.lt.s32.totalorder %s32_s10, %s32_s10 }
   0x9   :  { %p603_p3 = scmp.ne.s32.totalorder %s32_s10, %s602_s18  ;;  %p608_p5 = scmp.lt.s32.totalorder %s602_s18, %s602_s18 }
   0xb   :  { %p609_p6 = por %p608_p5, %p607_p4 }
   0xd   :  { %p610_p7 = pnand %p609_p6, %p603_p3 }
   0xf   :  { %613 = shalt.err (!%p610_p7)
}
  0x10   :  { %s641_s19 = smov 128   ;;  %s642_s20 = smov 8  }
  0x11   :  { %37 = dma.hbm_to_vmem [thread:$0]  %s770_s5, 2048, %s32_s10, [#allocation3], %s641_s19, %s641_s19, %s642_s20  }
  0x12   :  { %s643_s23 = smov [#allocation4]   ;;  %s614_s27 = scalar_lea.hbm %s772_s7, 2048 }
  0x13   :  { %s45_s24 = sshll.u32 %s643_s23, 4  ;;  %p615_p8 = scmp.ne.s32.totalorder %s772_s7, %s614_s27  ;;  %s46_s24 = int_to_ptr.vmem [resolvable:$true] %s45_s24 }
  0x14   :  { %p618_p9 = scmp.lt.u32.totalorder %s614_s27, %s772_s7 }
  0x16   :  { %p620_p10 = pnand %p618_p9, %p615_p8 }
  0x18   :  { %623 = shalt.err (!%p620_p10)
}
  0x19   :  { %s624_s12 = scalar_lea.vmem %s46_s24, 2048  ;;  %p629_p12 = scmp.lt.s32.totalorder %s46_s24, %s46_s24 }
  0x1a   :  { %p625_p11 = scmp.ne.s32.totalorder %s46_s24, %s624_s12  ;;  %p630_p13 = scmp.lt.s32.totalorder %s624_s12, %s624_s12 }
  0x1c   :  { %p631_p0 = por %p630_p13, %p629_p12 }
  0x1e   :  { %p632_p1 = pnand %p631_p0, %p625_p11 }
  0x20   :  { %635 = shalt.err (!%p632_p1)
}
  0x21   :  { %51 = dma.hbm_to_vmem [thread:$0]  %s772_s7, 2048, %s46_s24, [#allocation5], %s641_s19, %s641_s19, %s642_s20  }
  0x22   :  { %636 = dma.done.wait [#allocation3], 2048  }
  0x23   :  { %637 = vsyncadd [#allocation3], 4294965248 }
  0x24   :  { %638 = dma.done.wait [#allocation5], 2048  }
  0x25   :  { %639 = vsyncadd [#allocation5], 4294965248  ;;  %v644_v0 = vmov 0.0   ;;  %vm645_vm0 = vmmov 0   ;;  %vm64_vm1 = vcmask 64512   ;;  %v63_v1 = vld [vmem:[%s768_s3] sm:$0xff] }
  0x26   :  { %457 = vmatprep.subr.mxu0 %v644_v0  ;;  %462 = vmatprep.subr.mxu1 %v644_v0  ;;  %v61_v2 = vld [vmem:[%s767_s2] sm:$0xff]  ;;  %v221_v6 = vld [vmem:[#allocation2 + $0x8] sm:$0xff]  ;;  %v222_v8 = vld [vmem:[#allocation2 + $0x10] sm:$0xff]  ;;  %v646_v10 = vmov 0.0|0.0  }
  0x27   :  { %459 = vmatprep.mubr.msk.f32.mxu0 %vm645_vm0, %v644_v0  ;;  %464 = vmatprep.mubr.msk.f32.mxu1 %vm645_vm0, %v644_v0  ;;  %v62_v3 = vld [vmem:[%s766_s1] sm:$0xff]  ;;  %v223_v9 = vld [vmem:[#allocation2 + $0x18] sm:$0xff]  ;;  %v225_v13 = vld [vmem:[#allocation2 + $0x28] sm:$0xff] }
  0x28   :  { %458 = vmatpush3.msra.mxu0 %v63_v1  ;;  %463 = vmatpush3.msra.mxu1 %v61_v2  ;;  %v60_v4 = vld [vmem:[%s765_s0] sm:$0xff]  ;;  %v541_v11 = vpack.c.bf16 %v223_v9, %v222_v8  ;;  %v226_v15 = vld [vmem:[#allocation2 + $0x30] sm:$0xff]  ;;  %v227_v16 = vld [vmem:[#allocation2 + $0x38] sm:$0xff] }
  0x29   :  { %v220_v5 = vld [vmem:[#allocation2] sm:$0xff]  ;;  %460 = vmatmul.mubr.msk.f32.vlgmr.msra.gmra.mrb[0].mxu0 %vm64_vm1, %v62_v3  ;;  %465 = vmatmul.mubr.msk.f32.vlgmr.msra.gmra.mrb[0].mxu1 %vm64_vm1, %v60_v4  ;;  %v547_v17 = vpack.c.bf16 %v227_v16, %v226_v15  ;;  %v229_v19 = vld [vmem:[#allocation2 + $0x48] sm:$0xff]  ;;  %v230_v21 = vld [vmem:[#allocation2 + $0x50] sm:$0xff] }
  0x2a   :  { %v538_v7 = vpack.c.bf16 %v221_v6, %v220_v5  ;;  %537 = vmatprep.subr.bf16.mxu0 %v646_v10  ;;  %499 = vmatprep.mubr.msk.f32.mxu0 %vm645_vm0, %v644_v0  ;;  %v224_v12 = vld [vmem:[#allocation2 + $0x20] sm:$0xff]  ;;  %v231_v22 = vld [vmem:[#allocation2 + $0x58] sm:$0xff]  ;;  %v233_v25 = vld [vmem:[#allocation2 + $0x68] sm:$0xff] }
  0x2b   :  { %561 = vmatprep.subr.bf16.mxu1 %v646_v10  ;;  %534 = vmatprep.mubr.msk.f32.mxu1 %vm645_vm0, %v644_v0  ;;  %v544_v14 = vpack.c.bf16 %v225_v13, %v224_v12  ;;  %v228_v18 = vld [vmem:[#allocation2 + $0x40] sm:$0xff]  ;;  %v553_v23 = vpack.c.bf16 %v231_v22, %v230_v21  ;;  %v234_v27 = vld [vmem:[#allocation2 + $0x70] sm:$0xff]  ;;  %v235_v28 = vld [vmem:[#allocation2 + $0x78] sm:$0xff] }
  0x2c   :  { %539 = vmatpush3.bf16.msra.mxu0 %v538_v7  ;;  %v550_v20 = vpack.c.bf16 %v229_v19, %v228_v18  ;;  %v232_v24 = vld [vmem:[#allocation2 + $0x60] sm:$0xff]  ;;  %v559_v29 = vpack.c.bf16 %v235_v28, %v234_v27  ;;  %v315_v31 = vld [vmem:[#allocation4 + $0x8] sm:$0xff]  ;;  %v316_v32 = vld [vmem:[#allocation4 + $0x10] sm:$0xff] }
  0x2d   :  { %540 = vmatprep.subr.bf16.mxu0 %v646_v10  ;;  %v556_v26 = vpack.c.bf16 %v233_v25, %v232_v24  ;;  %v314_v30 = vld [vmem:[#allocation4] sm:$0xff]  ;;  %v317_v34 = vld [vmem:[#allocation4 + $0x18] sm:$0xff]  ;;  %v319_v37 = vld [vmem:[#allocation4 + $0x28] sm:$0xff] }
  0x2e   :  { %v562_v33 = vpack.c.bf16 %v315_v31, %v314_v30  ;;  %v565_v35 = vpack.c.bf16 %v317_v34, %v316_v32  ;;  %v318_v36 = vld [vmem:[#allocation4 + $0x20] sm:$0xff]  ;;  %v320_v39 = vld [vmem:[#allocation4 + $0x30] sm:$0xff]  ;;  %v321_v40 = vld [vmem:[#allocation4 + $0x38] sm:$0xff] }
  0x2f   :  { %v568_v38 = vpack.c.bf16 %v319_v37, %v318_v36  ;;  %v571_v41 = vpack.c.bf16 %v321_v40, %v320_v39  ;;  %v322_v42 = vld [vmem:[#allocation4 + $0x40] sm:$0xff]  ;;  %v323_v43 = vld [vmem:[#allocation4 + $0x48] sm:$0xff]  ;;  %v324_v45 = vld [vmem:[#allocation4 + $0x50] sm:$0xff] }
  0x30   :  { %542 = vmatpush3.bf16.msra.mxu0 %v541_v11  ;;  %563 = vmatpush3.bf16.msra.mxu1 %v562_v33  ;;  %v574_v44 = vpack.c.bf16 %v323_v43, %v322_v42  ;;  %v325_v46 = vld [vmem:[#allocation4 + $0x58] sm:$0xff]  ;;  %v326_v48 = vld [vmem:[#allocation4 + $0x60] sm:$0xff]  ;;  %v327_v49 = vld [vmem:[#allocation4 + $0x68] sm:$0xff] }
  0x31   :  { %543 = vmatprep.subr.bf16.mxu0 %v646_v10  ;;  %564 = vmatprep.subr.bf16.mxu1 %v646_v10  ;;  %v577_v47 = vpack.c.bf16 %v325_v46, %v324_v45  ;;  %v580_v50 = vpack.c.bf16 %v327_v49, %v326_v48  ;;  %v416_v53 = vld [vmem:[%s769_s4] ss:$0 sm:$0xff]  ;;  %v328_v59 = vld [vmem:[#allocation4 + $0x70] sm:$0xff]  ;;  %v329_v60 = vld [vmem:[#allocation4 + $0x78] sm:$0xff] }
  0x32   :  { %v583_v61 = vpack.c.bf16 %v329_v60, %v328_v59  ;;  %v417_v62 = vld [vmem:[%s771_s6] ss:$0 sm:$0xff] }
  0x33   :  { %v418_v3 = vld [vmem:[%s773_s8] ss:$0 sm:$0xff] }
  0x34   :  { %545 = vmatpush3.bf16.msra.mxu0 %v544_v14  ;;  %566 = vmatpush3.bf16.msra.mxu1 %v565_v35 }
  0x35   :  { %546 = vmatprep.subr.bf16.mxu0 %v646_v10  ;;  %567 = vmatprep.subr.bf16.mxu1 %v646_v10 }
  0x38   :  { %548 = vmatpush3.bf16.msra.mxu0 %v547_v17  ;;  %569 = vmatpush3.bf16.msra.mxu1 %v568_v38 }
  0x39   :  { %549 = vmatprep.subr.bf16.mxu0 %v646_v10  ;;  %570 = vmatprep.subr.bf16.mxu1 %v646_v10 }
  0x3c   :  { %551 = vmatpush3.bf16.msra.mxu0 %v550_v20  ;;  %572 = vmatpush3.bf16.msra.mxu1 %v571_v41 }
  0x3d   :  { %552 = vmatprep.subr.bf16.mxu0 %v646_v10  ;;  %573 = vmatprep.subr.bf16.mxu1 %v646_v10 }
  0x40   :  { %554 = vmatpush3.bf16.msra.mxu0 %v553_v23  ;;  %575 = vmatpush3.bf16.msra.mxu1 %v574_v44 }
  0x41   :  { %555 = vmatprep.subr.bf16.mxu0 %v646_v10  ;;  %576 = vmatprep.subr.bf16.mxu1 %v646_v10 }
  0x44   :  { %557 = vmatpush3.bf16.msra.mxu0 %v556_v26  ;;  %578 = vmatpush3.bf16.msra.mxu1 %v577_v47 }
  0x45   :  { %558 = vmatprep.subr.bf16.mxu0 %v646_v10  ;;  %579 = vmatprep.subr.bf16.mxu1 %v646_v10 }
  0x48   :  { %560 = vmatpush3.bf16.msra.mxu0 %v559_v29  ;;  %581 = vmatpush3.bf16.msra.mxu1 %v580_v50 }
  0x49   :  { %582 = vmatprep.subr.bf16.mxu1 %v646_v10 }
  0x4c   :  { %584 = vmatpush3.bf16.msra.mxu1 %v583_v61 }
  0xfc   :  { %v134_v51 = vpop.f32.mrb[0].mxu0  ;;  %v207_v52 = vpop.f32.mrb[0].mxu1 }
  0xfd   :  { %v208_v54 = vadd.f32 %v207_v52, %v134_v51  ;;  %v461_v55 = vpop.f32.mrb[1].mxu0  ;;  %v466_v56 = vpop.f32.mrb[1].mxu1 }
  0xff   :  { %v218_v57 = vadd.f32 %v416_v53, %v208_v54 }
 0x101   :  { %v219_v58 = vmax.f32 %v218_v57, 0.0 }
 0x103   :  { %500 = vmatmul.mubr.f32.vlgmr.msra.gmra.mrb[2].mxu0 %v219_v58 }
 0x1d6   :  { %v309_v63 = vpop.f32.mrb[2].mxu0 }
 0x1d7   :  { %v310_v0 = vadd.f32 %v417_v62, %v309_v63  ;;  %v501_v1 = vpop.f32.mrb[3].mxu0 }
 0x1d9   :  { %v313_v2 = vmax.f32 %v310_v0, 0.0 }
 0x1db   :  { %535 = vmatmul.mubr.f32.vlgmr.msra.gmra.mrb[2].mxu1 %v313_v2 }
 0x2ae   :  { %v403_v4 = vpop.f32.mrb[2].mxu1 }
 0x2af   :  { %v404_v5 = vadd.f32 %v418_v3, %v403_v4  ;;  %v536_v6 = vpop.f32.mrb[3].mxu1 }
 0x2b1   :  { %407 = vst [vmem:[%s774_s9] sm:$0xff] %v404_v5 }
 0x2b2   :  { %412 = vsyncpa [#allocation3], 1 }
 0x2b3   :  { %413 = vsyncpa [#allocation5], 1 }

// kernel: _forward_impl.1
= control target key start
LH: loop header
LB: loop body
LE: loop exit
PB: predicated region body
PF: predicated region fallthrough
CT: control target
= control target key end

     0   :  { %14 = vsyncpa [#allocation3], 0  ;;  %s765_s0 = inlined_call_operand.vmem [shape: f32[8,8], index: 0, kind: input, shape index: {}]   ;;  %s766_s1 = inlined_call_operand.vmem [shape: f32[8,8], index: 1, kind: input, shape index: {}]   ;;  %s767_s2 = inlined_call_operand.vmem [shape: f32[8,128], index: 2, kind: input, shape index: {}]   ;;  %s768_s3 = inlined_call_operand.vmem [shape: f32[8,128], index: 3, kind: input, shape index: {}]   ;;  %s769_s4 = inlined_call_operand.vmem [shape: f32[1,128], index: 4, kind: input, shape index: {}]   ;;  %s770_s5 = inlined_call_operand.hbm [shape: f32[128,128], index: 5, kind: input, shape index: {}]   ;;  %s771_s6 = inlined_call_operand.vmem [shape: f32[1,128], index: 6, kind: input, shape index: {}]   ;;  %s772_s7 = inlined_call_operand.hbm [shape: f32[128,128], index: 7, kind: input, shape index: {}]   ;;  %s773_s8 = inlined_call_operand.vmem [shape: f32[1,128], index: 8, kind: input, shape index: {}]   ;;  %s774_s9 = inlined_call_operand.vmem [shape: f32[8,128], index: 9, kind: output, shape index: {}]  }
   0x1   :  { %15 = vsyncpa [#allocation5], 0  ;;  %s640_s30 = smov [#allocation2]   ;;  %s592_s13 = scalar_lea.hbm %s770_s5, 2048 }
   0x2   :  { %s31_s10 = sshll.u32 %s640_s30, 4  ;;  %p593_p0 = scmp.ne.s32.totalorder %s770_s5, %s592_s13  ;;  %s32_s10 = int_to_ptr.vmem [resolvable:$true] %s31_s10 }
   0x3   :  { %p596_p1 = scmp.lt.u32.totalorder %s592_s13, %s770_s5 }
   0x5   :  { %p598_p2 = pnand %p596_p1, %p593_p0 }
   0x7   :  { %601 = shalt.err (!%p598_p2)
}
   0x8   :  { %s602_s18 = scalar_lea.vmem %s32_s10, 2048  ;;  %p607_p4 = scmp.lt.s32.totalorder %s32_s10, %s32_s10 }
   0x9   :  { %p603_p3 = scmp.ne.s32.totalorder %s32_s10, %s602_s18  ;;  %p608_p5 = scmp.lt.s32.totalorder %s602_s18, %s602_s18 }
   0xb   :  { %p609_p6 = por %p608_p5, %p607_p4 }
   0xd   :  { %p610_p7 = pnand %p609_p6, %p603_p3 }
   0xf   :  { %613 = shalt.err (!%p610_p7)
}
  0x10   :  { %s641_s19 = smov 128   ;;  %s642_s20 = smov 8  }
  0x11   :  { %37 = dma.hbm_to_vmem [thread:$0]  %s770_s5, 2048, %s32_s10, [#allocation3], %s641_s19, %s641_s19, %s642_s20  }
  0x12   :  { %s643_s23 = smov [#allocation4]   ;;  %s614_s27 = scalar_lea.hbm %s772_s7, 2048 }
  0x13   :  { %s45_s24 = sshll.u32 %s643_s23, 4  ;;  %p615_p8 = scmp.ne.s32.totalorder %s772_s7, %s614_s27  ;;  %s46_s24 = int_to_ptr.vmem [resolvable:$true] %s45_s24 }
  0x14   :  { %p618_p9 = scmp.lt.u32.totalorder %s614_s27, %s772_s7 }
  0x16   :  { %p620_p10 = pnand %p618_p9, %p615_p8 }
  0x18   :  { %623 = shalt.err (!%p620_p10)
}
  0x19   :  { %s624_s12 = scalar_lea.vmem %s46_s24, 2048  ;;  %p629_p12 = scmp.lt.s32.totalorder %s46_s24, %s46_s24 }
  0x1a   :  { %p625_p11 = scmp.ne.s32.totalorder %s46_s24, %s624_s12  ;;  %p630_p13 = scmp.lt.s32.totalorder %s624_s12, %s624_s12 }
  0x1c   :  { %p631_p0 = por %p630_p13, %p629_p12 }
  0x1e   :  { %p632_p1 = pnand %p631_p0, %p625_p11 }
  0x20   :  { %635 = shalt.err (!%p632_p1)
}
  0x21   :  { %51 = dma.hbm_to_vmem [thread:$0]  %s772_s7, 2048, %s46_s24, [#allocation5], %s641_s19, %s641_s19, %s642_s20  }
  0x22   :  { %636 = dma.done.wait [#allocation3], 2048  }
  0x23   :  { %637 = vsyncadd [#allocation3], 4294965248 }
  0x24   :  { %638 = dma.done.wait [#allocation5], 2048  }
  0x25   :  { %639 = vsyncadd [#allocation5], 4294965248  ;;  %v644_v0 = vmov 0.0   ;;  %vm645_vm0 = vmmov 0   ;;  %vm64_vm1 = vcmask 64512   ;;  %v63_v1 = vld [vmem:[%s768_s3] sm:$0xff] }
  0x26   :  { %457 = vmatprep.subr.mxu0 %v644_v0  ;;  %462 = vmatprep.subr.mxu1 %v644_v0  ;;  %v61_v2 = vld [vmem:[%s767_s2] sm:$0xff]  ;;  %v221_v6 = vld [vmem:[#allocation2 + $0x8] sm:$0xff]  ;;  %v222_v8 = vld [vmem:[#allocation2 + $0x10] sm:$0xff]  ;;  %v646_v10 = vmov 0.0|0.0  }
  0x27   :  { %459 = vmatprep.mubr.msk.f32.mxu0 %vm645_vm0, %v644_v0  ;;  %464 = vmatprep.mubr.msk.f32.mxu1 %vm645_vm0, %v644_v0  ;;  %v62_v3 = vld [vmem:[%s766_s1] sm:$0xff]  ;;  %v223_v9 = vld [vmem:[#allocation2 + $0x18] sm:$0xff]  ;;  %v225_v13 = vld [vmem:[#allocation2 + $0x28] sm:$0xff] }
  0x28   :  { %458 = vmatpush3.msra.mxu0 %v63_v1  ;;  %463 = vmatpush3.msra.mxu1 %v61_v2  ;;  %v60_v4 = vld [vmem:[%s765_s0] sm:$0xff]  ;;  %v541_v11 = vpack.c.bf16 %v223_v9, %v222_v8  ;;  %v226_v15 = vld [vmem:[#allocation2 + $0x30] sm:$0xff]  ;;  %v227_v16 = vld [vmem:[#allocation2 + $0x38] sm:$0xff] }
  0x29   :  { %v220_v5 = vld [vmem:[#allocation2] sm:$0xff]  ;;  %460 = vmatmul.mubr.msk.f32.vlgmr.msra.gmra.mrb[0].mxu0 %vm64_vm1, %v62_v3  ;;  %465 = vmatmul.mubr.msk.f32.vlgmr.msra.gmra.mrb[0].mxu1 %vm64_vm1, %v60_v4  ;;  %v547_v17 = vpack.c.bf16 %v227_v16, %v226_v15  ;;  %v229_v19 = vld [vmem:[#allocation2 + $0x48] sm:$0xff]  ;;  %v230_v21 = vld [vmem:[#allocation2 + $0x50] sm:$0xff] }
  0x2a   :  { %v538_v7 = vpack.c.bf16 %v221_v6, %v220_v5  ;;  %537 = vmatprep.subr.bf16.mxu0 %v646_v10  ;;  %499 = vmatprep.mubr.msk.f32.mxu0 %vm645_vm0, %v644_v0  ;;  %v224_v12 = vld [vmem:[#allocation2 + $0x20] sm:$0xff]  ;;  %v231_v22 = vld [vmem:[#allocation2 + $0x58] sm:$0xff]  ;;  %v233_v25 = vld [vmem:[#allocation2 + $0x68] sm:$0xff] }
  0x2b   :  { %561 = vmatprep.subr.bf16.mxu1 %v646_v10  ;;  %534 = vmatprep.mubr.msk.f32.mxu1 %vm645_vm0, %v644_v0  ;;  %v544_v14 = vpack.c.bf16 %v225_v13, %v224_v12  ;;  %v228_v18 = vld [vmem:[#allocation2 + $0x40] sm:$0xff]  ;;  %v553_v23 = vpack.c.bf16 %v231_v22, %v230_v21  ;;  %v234_v27 = vld [vmem:[#allocation2 + $0x70] sm:$0xff]  ;;  %v235_v28 = vld [vmem:[#allocation2 + $0x78] sm:$0xff] }
  0x2c   :  { %539 = vmatpush3.bf16.msra.mxu0 %v538_v7  ;;  %v550_v20 = vpack.c.bf16 %v229_v19, %v228_v18  ;;  %v232_v24 = vld [vmem:[#allocation2 + $0x60] sm:$0xff]  ;;  %v559_v29 = vpack.c.bf16 %v235_v28, %v234_v27  ;;  %v315_v31 = vld [vmem:[#allocation4 + $0x8] sm:$0xff]  ;;  %v316_v32 = vld [vmem:[#allocation4 + $0x10] sm:$0xff] }
  0x2d   :  { %540 = vmatprep.subr.bf16.mxu0 %v646_v10  ;;  %v556_v26 = vpack.c.bf16 %v233_v25, %v232_v24  ;;  %v314_v30 = vld [vmem:[#allocation4] sm:$0xff]  ;;  %v317_v34 = vld [vmem:[#allocation4 + $0x18] sm:$0xff]  ;;  %v319_v37 = vld [vmem:[#allocation4 + $0x28] sm:$0xff] }
  0x2e   :  { %v562_v33 = vpack.c.bf16 %v315_v31, %v314_v30  ;;  %v565_v35 = vpack.c.bf16 %v317_v34, %v316_v32  ;;  %v318_v36 = vld [vmem:[#allocation4 + $0x20] sm:$0xff]  ;;  %v320_v39 = vld [vmem:[#allocation4 + $0x30] sm:$0xff]  ;;  %v321_v40 = vld [vmem:[#allocation4 + $0x38] sm:$0xff] }
  0x2f   :  { %v568_v38 = vpack.c.bf16 %v319_v37, %v318_v36  ;;  %v571_v41 = vpack.c.bf16 %v321_v40, %v320_v39  ;;  %v322_v42 = vld [vmem:[#allocation4 + $0x40] sm:$0xff]  ;;  %v323_v43 = vld [vmem:[#allocation4 + $0x48] sm:$0xff]  ;;  %v324_v45 = vld [vmem:[#allocation4 + $0x50] sm:$0xff] }
  0x30   :  { %542 = vmatpush3.bf16.msra.mxu0 %v541_v11  ;;  %563 = vmatpush3.bf16.msra.mxu1 %v562_v33  ;;  %v574_v44 = vpack.c.bf16 %v323_v43, %v322_v42  ;;  %v325_v46 = vld [vmem:[#allocation4 + $0x58] sm:$0xff]  ;;  %v326_v48 = vld [vmem:[#allocation4 + $0x60] sm:$0xff]  ;;  %v327_v49 = vld [vmem:[#allocation4 + $0x68] sm:$0xff] }
  0x31   :  { %543 = vmatprep.subr.bf16.mxu0 %v646_v10  ;;  %564 = vmatprep.subr.bf16.mxu1 %v646_v10  ;;  %v577_v47 = vpack.c.bf16 %v325_v46, %v324_v45  ;;  %v580_v50 = vpack.c.bf16 %v327_v49, %v326_v48  ;;  %v416_v53 = vld [vmem:[%s769_s4] ss:$0 sm:$0xff]  ;;  %v328_v59 = vld [vmem:[#allocation4 + $0x70] sm:$0xff]  ;;  %v329_v60 = vld [vmem:[#allocation4 + $0x78] sm:$0xff] }
  0x32   :  { %v583_v61 = vpack.c.bf16 %v329_v60, %v328_v59  ;;  %v417_v62 = vld [vmem:[%s771_s6] ss:$0 sm:$0xff] }
  0x33   :  { %v418_v3 = vld [vmem:[%s773_s8] ss:$0 sm:$0xff] }
  0x34   :  { %545 = vmatpush3.bf16.msra.mxu0 %v544_v14  ;;  %566 = vmatpush3.bf16.msra.mxu1 %v565_v35 }
  0x35   :  { %546 = vmatprep.subr.bf16.mxu0 %v646_v10  ;;  %567 = vmatprep.subr.bf16.mxu1 %v646_v10 }
  0x38   :  { %548 = vmatpush3.bf16.msra.mxu0 %v547_v17  ;;  %569 = vmatpush3.bf16.msra.mxu1 %v568_v38 }
  0x39   :  { %549 = vmatprep.subr.bf16.mxu0 %v646_v10  ;;  %570 = vmatprep.subr.bf16.mxu1 %v646_v10 }
  0x3c   :  { %551 = vmatpush3.bf16.msra.mxu0 %v550_v20  ;;  %572 = vmatpush3.bf16.msra.mxu1 %v571_v41 }
  0x3d   :  { %552 = vmatprep.subr.bf16.mxu0 %v646_v10  ;;  %573 = vmatprep.subr.bf16.mxu1 %v646_v10 }
  0x40   :  { %554 = vmatpush3.bf16.msra.mxu0 %v553_v23  ;;  %575 = vmatpush3.bf16.msra.mxu1 %v574_v44 }
  0x41   :  { %555 = vmatprep.subr.bf16.mxu0 %v646_v10  ;;  %576 = vmatprep.subr.bf16.mxu1 %v646_v10 }
  0x44   :  { %557 = vmatpush3.bf16.msra.mxu0 %v556_v26  ;;  %578 = vmatpush3.bf16.msra.mxu1 %v577_v47 }
  0x45   :  { %558 = vmatprep.subr.bf16.mxu0 %v646_v10  ;;  %579 = vmatprep.subr.bf16.mxu1 %v646_v10 }
  0x48   :  { %560 = vmatpush3.bf16.msra.mxu0 %v559_v29  ;;  %581 = vmatpush3.bf16.msra.mxu1 %v580_v50 }
  0x49   :  { %582 = vmatprep.subr.bf16.mxu1 %v646_v10 }
  0x4c   :  { %584 = vmatpush3.bf16.msra.mxu1 %v583_v61 }
  0xfc   :  { %v134_v51 = vpop.f32.mrb[0].mxu0  ;;  %v207_v52 = vpop.f32.mrb[0].mxu1 }
  0xfd   :  { %v208_v54 = vadd.f32 %v207_v52, %v134_v51  ;;  %v461_v55 = vpop.f32.mrb[1].mxu0  ;;  %v466_v56 = vpop.f32.mrb[1].mxu1 }
  0xff   :  { %v218_v57 = vadd.f32 %v416_v53, %v208_v54 }
 0x101   :  { %v219_v58 = vmax.f32 %v218_v57, 0.0 }
 0x103   :  { %500 = vmatmul.mubr.f32.vlgmr.msra.gmra.mrb[2].mxu0 %v219_v58 }
 0x1d6   :  { %v309_v63 = vpop.f32.mrb[2].mxu0 }
 0x1d7   :  { %v310_v0 = vadd.f32 %v417_v62, %v309_v63  ;;  %v501_v1 = vpop.f32.mrb[3].mxu0 }
 0x1d9   :  { %v313_v2 = vmax.f32 %v310_v0, 0.0 }
 0x1db   :  { %535 = vmatmul.mubr.f32.vlgmr.msra.gmra.mrb[2].mxu1 %v313_v2 }
 0x2ae   :  { %v403_v4 = vpop.f32.mrb[2].mxu1 }
 0x2af   :  { %v404_v5 = vadd.f32 %v418_v3, %v403_v4  ;;  %v536_v6 = vpop.f32.mrb[3].mxu1 }
 0x2b1   :  { %407 = vst [vmem:[%s774_s9] sm:$0xff] %v404_v5 }
 0x2b2   :  { %412 = vsyncpa [#allocation3], 1 }
 0x2b3   :  { %413 = vsyncpa [#allocation5], 1 }

</bundles_post_ra>
